<compile_context>
chip_gen: v7x
topology: tpu7x:2x2x1
jax: 0.10.0
libtpu: 0.0.40
codegen_flags: <defaults>
</compile_context>

<pallas_src>
import functools
import math

import jax
import jax.numpy as jnp
from jax.experimental import pallas as pl
from jax.experimental.pallas import tpu as pltpu


_LANE = 128


def _shard_attention_kernel(x_ref, w_ref, o_ref, v_ref, acc_ref, *,
                            num_heads, head_size, c_pad, op_dtype):
    """One batch-block grid step.

    x_ref  : (b_blk, T, C)          input block (native dtype)
    w_ref  : (C, nh*c_pad)          fused projection weight [W_0 | ... | W_{nh-1}]
    o_ref  : (b_blk, T, c_pad)      output block (lane-dense padded channels)
    v_ref  : (b_blk, T, nh*c_pad)   VMEM scratch, V = x @ W_cat (op_dtype)
    acc_ref: (b_blk, T, c_pad)      VMEM scratch, f32 output accumulator
    """
    b_blk, T, C = x_ref.shape
    nh, hs = num_heads, head_size
    inv_sqrt_hs = 1.0 / math.sqrt(hs)

    # Fused output projection, hoisted out of the head loop:
    #   out = sum_h A_h @ (x @ W_h)   with   V = x @ [W_0 | ... | W_{nh-1}]
    # -> one (b_blk*T, C) @ (C, nh*c_pad) MXU matmul (K=C, N=nh*c_pad) instead of
    #    nh tiny (C, C) matmuls inside the head loop.
    x_flat = x_ref[...].reshape(b_blk * T, C).astype(op_dtype)
    v = jnp.dot(x_flat, w_ref[...].astype(op_dtype),
                preferred_element_type=jnp.float32)
    # Park V in VMEM scratch so it is not held in vregs across the unrolled loop.
    v_ref[...] = v.reshape(b_blk, T, nh * c_pad).astype(v_ref.dtype)

    # f32 output accumulator lives in VMEM scratch (not in vregs).
    acc_ref[...] = jnp.zeros_like(acc_ref)

    # TODO(synk): for T >= ~512 switch to a flash-style online-softmax loop over
    #             key tiles instead of materializing (b_blk, T, T) f32 scores.
    for h in range(nh):                                   # nh is small: static unroll
        # Re-slice x_ref per head (static lane slice) instead of keeping the
        # whole x tile live across the unrolled head loop.
        q = x_ref[:, :, h * hs:(h + 1) * hs]              # (b_blk, T, hs), native
        qs = (q * inv_sqrt_hs).astype(op_dtype)           # fold 1/sqrt(hs) into q
        qk = q.astype(op_dtype)
        # scores = (q*scale) @ q^T, contracting last dims (no explicit transpose).
        s = jnp.einsum('btk,bsk->bts', qs, qk,
                       preferred_element_type=jnp.float32)     # (b_blk, T, T) f32

        # Softmax in f32; normalization deferred past the value matmul.
        # TODO(synk): the optional attention `mask` (masked_fill with -inf) would
        #             be applied to `s` here; only the mask=None path is done.
        # TODO(synk): if the single EUP port binds on v6e/v7x, compute exp in bf16.
        m = jnp.max(s, axis=-1, keepdims=True)
        p = jnp.exp(s - m)                                      # (b_blk, T, T) f32
        l = jnp.sum(p, axis=-1, keepdims=True)                  # (b_blk, T, 1) f32

        vh = v_ref[:, :, h * c_pad:(h + 1) * c_pad]             # (b_blk, T, c_pad)
        head = jnp.einsum('bts,bsc->btc', p.astype(op_dtype), vh,
                          preferred_element_type=jnp.float32)   # (b_blk, T, c_pad) f32

        # Deferred normalization with an EXACT reciprocal/divide (the approximate
        # EUP reciprocal was one source of the v2 tolerance failure).
        acc_ref[...] += head * (1.0 / l)

    o_ref[...] = acc_ref[...].astype(o_ref.dtype)


def _vmem_capacity_bytes():
    """Physical VMEM per TensorCore; conservative (v7x-sized) 64 MiB fallback."""
    try:
        cap = int(pltpu.get_tpu_info().vmem_capacity_bytes)
        if cap > 0:
            return cap
    except Exception:
        pass
    return 64 * 1024 * 1024


def _pick_batch_block(B, T, C, c_pad, nh, x_itemsize, op_itemsize, vmem_budget,
                      target_rows=512, min_grid=2):
    """VMEM- and MXU-driven batch block:
      * prefer the smallest block reaching >= target_rows rows per grid step
        (amortizes ~0.35us/step overhead, gives the projection matmul a real M),
        otherwise the largest block that fits the VMEM budget;
      * keep >= min_grid grid steps when B allows (DMA/compute overlap, and
        >= 2 steps per TensorCore on multi-TC parts)."""

    def block_bytes(b):
        rows = b * T
        return (2 * rows * C * x_itemsize             # x block (double-buffered)
                + 2 * rows * c_pad * x_itemsize       # out block (double-buffered)
                + 2 * C * nh * c_pad * op_itemsize    # weight (<= 2 buffers)
                + rows * nh * c_pad * op_itemsize     # V scratch
                + rows * c_pad * 4                    # f32 accumulator scratch
                + 3 * rows * T * 4                    # scores/p live intermediates
                + rows * c_pad * 4)                   # head intermediate

    divisors = [d for d in range(1, B + 1) if B % d == 0]
    fitting = [d for d in divisors if block_bytes(d) <= vmem_budget] or [1]
    reach = [d for d in fitting if d * T >= target_rows]
    b = min(reach) if reach else max(fitting)
    while B // b < min_grid:
        smaller = [d for d in fitting if d < b]
        if not smaller:
            break
        b = max(smaller)
    return b


def shard_attention(x, weight, num_heads, *, mxu_dtype=None):
    """Pallas ShardAttention forward.

    x        : (B, T, C)
    weight   : (num_heads*C, C)
    mxu_dtype: optional dtype for MXU operands (e.g. jnp.bfloat16); accumulation
               is always f32.  None keeps the input dtype (exact-f32 path).
    """
    B, T, C = x.shape
    nh = num_heads
    assert C % nh == 0, "num_heads must divide embed_size"
    hs = C // nh
    assert weight.shape == (nh * C, C)

    op_dtype = jnp.dtype(mxu_dtype) if mxu_dtype is not None else jnp.dtype(x.dtype)

    # ---- lane-dense output: pad output channels to a multiple of 128 ----------
    c_pad = -(-C // _LANE) * _LANE
    w3 = weight.reshape(nh, C, C)                 # w3[h] = weight[h*C:(h+1)*C, :]
    if c_pad != C:
        w3 = jnp.pad(w3, ((0, 0), (0, 0), (0, c_pad - C)))
    # Fused projection weight [W_0 | W_1 | ... | W_{nh-1}] of shape (C, nh*c_pad).
    w_cat = jnp.transpose(w3, (1, 0, 2)).reshape(C, nh * c_pad).astype(op_dtype)

    # ---- per-generation VMEM budget & batch-block policy -----------------------
    vmem_cap = _vmem_capacity_bytes()             # 64 MiB (v7x) / 128 MiB (v5e, v6e)
    vmem_limit = min(int(vmem_cap * 0.85), vmem_cap - (8 << 20))
    b_blk = _pick_batch_block(B, T, C, c_pad, nh,
                              jnp.dtype(x.dtype).itemsize, op_dtype.itemsize,
                              vmem_budget=int(vmem_limit * 0.9))
    grid = (B // b_blk,)

    # Grid-invariant weight: single-buffer it once it is big enough to matter
    # (avoids a duplicate (C, nh*c_pad) VMEM buffer at production sizes); the
    # tiny demo weight keeps the default double-buffered path.
    w_spec_kwargs = {}
    if w_cat.size * w_cat.dtype.itemsize > (1 << 20):
        w_spec_kwargs["pipeline_mode"] = pl.Buffered(1)
    # TODO(synk): for very large nh*C the resident weight no longer fits VMEM and
    #             the projection/grid would also have to tile the nh*c_pad dim.
    w_spec = pl.BlockSpec((C, nh * c_pad), lambda bb: (0, 0), **w_spec_kwargs)

    kernel = functools.partial(_shard_attention_kernel,
                               num_heads=nh, head_size=hs, c_pad=c_pad,
                               op_dtype=op_dtype)

    out_pad = pl.pallas_call(
        kernel,
        out_shape=jax.ShapeDtypeStruct((B, T, c_pad), x.dtype),
        grid_spec=pltpu.PrefetchScalarGridSpec(
            num_scalar_prefetch=0,
            grid=grid,
            in_specs=[
                pl.BlockSpec((b_blk, T, C), lambda bb: (bb, 0, 0)),
                w_spec,
            ],
            out_specs=pl.BlockSpec((b_blk, T, c_pad), lambda bb: (bb, 0, 0)),
            scratch_shapes=[
                pltpu.VMEM((b_blk, T, nh * c_pad), op_dtype),   # V = x @ W_cat
                pltpu.VMEM((b_blk, T, c_pad), jnp.float32),     # output accumulator
            ],
        ),
        compiler_params=pltpu.CompilerParams(
            dimension_semantics=("parallel",),
            vmem_limit_bytes=int(vmem_limit),
        ),
    )(x, w_cat)

    return out_pad[..., :C] if c_pad != C else out_pad


def shard_attention_ref(x, weight, num_heads):
    """Pure-JAX reference mirroring the PyTorch forward (mask=None).

    Matmuls use Precision.HIGHEST: XLA's TPU default demotes f32 matmuls to
    single-pass bf16, which is what broke the v2 kernel-vs-reference comparison.
    """
    B, T, C = x.shape
    hs = C // num_heads
    hi = jax.lax.Precision.HIGHEST
    y = x.reshape(B, T, num_heads, hs).transpose(0, 2, 1, 3)            # b h t k
    scores = jnp.einsum('bhtk,bhsk->bhts', y, y, precision=hi) / math.sqrt(hs)
    attn = jax.nn.softmax(scores, axis=-1)
    xx = jnp.broadcast_to(x[:, None, :, :], (B, num_heads, T, C))       # b h s c
    heads = jnp.einsum('bhts,bhsc->bhtc', attn, xx, precision=hi)       # b h t c
    heads = heads.transpose(0, 2, 1, 3).reshape(B, T, num_heads * C)    # b t (h c)
    return jnp.einsum('btk,kc->btc', heads, weight, precision=hi)


if __name__ == "__main__":
    B, T, C, NH = 2, 8, 32, 4          # embed_size=32, num_heads=4, seq=8

    key = jax.random.PRNGKey(0)
    kx, kw = jax.random.split(key)
    x = jax.random.normal(kx, (B, T, C), dtype=jnp.float32)

    # Deterministic kaiming-uniform-style init for weight of shape (nh*C, C).
    bound = math.sqrt(6.0 / (NH * C))
    weight = jax.random.uniform(kw, (NH * C, C), dtype=jnp.float32,
                                minval=-bound, maxval=bound)

    ref = shard_attention_ref(x, weight, NH)
    ref_scale = float(jnp.max(jnp.abs(ref))) + 1e-6

    # Exact path: native f32 MXU operands (multi-pass f32 matmuls), exact softmax.
    out = jax.block_until_ready(shard_attention(x, weight, NH))
    assert out.shape == (B, T, C)
    err = float(jnp.max(jnp.abs(out - ref))) / ref_scale
    # Expected ~1e-6; headroom left for per-generation f32 MXU emulation details.
    assert err < 2e-2, f"f32 path mismatch vs reference (rel max err {err:.2e})"

    # Fast path: bf16 MXU operands, f32 accumulation (the production setting).
    out_bf16 = jax.block_until_ready(
        shard_attention(x, weight, NH, mxu_dtype=jnp.bfloat16))
    err_bf16 = float(jnp.max(jnp.abs(out_bf16 - ref))) / ref_scale
    assert err_bf16 < 1e-1, f"bf16 path mismatch vs reference (rel max err {err_bf16:.2e})"

    print("KERNEL_OK")
</pallas_src>

<mosaic_0001>
module attributes {stable_mosaic.version = 11 : i64} {
  func.func @_shard_attention_kernel(%arg0: i32, %arg1: memref<1x8x32xf32, #tpu.memory_space<vmem>>, %arg2: memref<32x512xf32, #tpu.memory_space<vmem>>, %arg3: memref<1x8x128xf32, #tpu.memory_space<vmem>>, %arg4: memref<1x8x512xf32, #tpu.memory_space<vmem>>, %arg5: memref<1x8x128xf32, #tpu.memory_space<vmem>>) attributes {dimension_semantics = [#tpu.dimension_semantics<parallel>], iteration_bounds = array<i64: 2>, scalar_prefetch = 0 : i64, scratch_operands = 2 : i64, tpu.core_type = #tpu.core_type<tc>, window_params = [{transform_indices = @transform_0, window_bounds = array<i64: 1, 8, 32>}, {pipeline_mode = #tpu.pipeline_mode<synchronous>, transform_indices = @transform_1, window_bounds = array<i64: 32, 512>}, {transform_indices = @transform_2, window_bounds = array<i64: 1, 8, 128>}]} {
    %c0 = arith.constant 0 : index
    %c0_0 = arith.constant 0 : index
    %c0_1 = arith.constant 0 : index
    %0 = vector.load %arg1[%c0, %c0_0, %c0_1] : memref<1x8x32xf32, #tpu.memory_space<vmem>>, vector<1x8x32xf32>
    %1 = vector.shape_cast %0 : vector<1x8x32xf32> to vector<8x32xf32>
    %c0_2 = arith.constant 0 : index
    %c0_3 = arith.constant 0 : index
    %2 = vector.load %arg2[%c0_2, %c0_3] : memref<32x512xf32, #tpu.memory_space<vmem>>, vector<32x512xf32>
    %cst = arith.constant dense<0.000000e+00> : vector<8x512xf32>
    %3 = tpu.matmul %1, %2, %cst {dimension_numbers = #tpu.dot_dimension_numbers<[1], [0], [0], [1], [0, 0, 1, 1], [], []>} : vector<8x32xf32>, vector<32x512xf32>, vector<8x512xf32> -> vector<8x512xf32>
    %4 = vector.shape_cast %3 : vector<8x512xf32> to vector<1x8x512xf32>
    %c0_4 = arith.constant 0 : index
    %c0_5 = arith.constant 0 : index
    %c0_6 = arith.constant 0 : index
    %5 = vector.load %arg4[%c0_4, %c0_5, %c0_6] : memref<1x8x512xf32, #tpu.memory_space<vmem>>, vector<1x8x512xf32>
    tpu.vector_store %arg4[%c0_4, %c0_5, %c0_6], %4 {strides = array<i32>} : memref<1x8x512xf32, #tpu.memory_space<vmem>>, vector<1x8x512xf32>,
    %cst_7 = arith.constant 0.000000e+00 : f32
    %6 = vector.broadcast %cst_7 : f32 to vector<1x8x128xf32>
    %c0_8 = arith.constant 0 : index
    %c0_9 = arith.constant 0 : index
    %c0_10 = arith.constant 0 : index
    %7 = vector.load %arg5[%c0_8, %c0_9, %c0_10] : memref<1x8x128xf32, #tpu.memory_space<vmem>>, vector<1x8x128xf32>
    tpu.vector_store %arg5[%c0_8, %c0_9, %c0_10], %6 {strides = array<i32>} : memref<1x8x128xf32, #tpu.memory_space<vmem>>, vector<1x8x128xf32>,
    %c0_11 = arith.constant 0 : index
    %c0_12 = arith.constant 0 : index
    %c0_13 = arith.constant 0 : index
    %8 = vector.load %arg1[%c0_11, %c0_12, %c0_13] : memref<1x8x32xf32, #tpu.memory_space<vmem>>, vector<1x8x8xf32>
    %cst_14 = arith.constant 0.353553385 : f32
    %9 = vector.broadcast %cst_14 : f32 to vector<1x8x8xf32>
    %10 = arith.mulf %8, %9 : vector<1x8x8xf32>
    "tpu.trace_start"() <{level = 10 : i32, message = "btk,bsk->bts"}> : () -> ()
    %cst_15 = arith.constant dense<0.000000e+00> : vector<1x8x8xf32>
    %11 = tpu.matmul %10, %8, %cst_15 {dimension_numbers = #tpu.dot_dimension_numbers<[2], [2], [1], [1], [0, 0, 0, 1, 1, 1], [0], [0]>} : vector<1x8x8xf32>, vector<1x8x8xf32>, vector<1x8x8xf32> -> vector<1x8x8xf32>
    "tpu.trace_stop"() : () -> ()
    %cst_16 = arith.constant dense<0xFF800000> : vector<1x8xf32>
    %12 = vector.multi_reduction <maximumf>, %11, %cst_16 [2] : vector<1x8x8xf32> to vector<1x8xf32>
    %13 = vector.shape_cast %12 : vector<1x8xf32> to vector<1x8x1xf32>
    %14 = vector.broadcast %13 : vector<1x8x1xf32> to vector<1x8x8xf32>
    %15 = arith.subf %11, %14 : vector<1x8x8xf32>
    %16 = math.exp %15 : vector<1x8x8xf32>
    %cst_17 = arith.constant dense<0.000000e+00> : vector<1x8xf32>
    %17 = vector.multi_reduction <add>, %16, %cst_17 [2] : vector<1x8x8xf32> to vector<1x8xf32>
    %18 = vector.shape_cast %17 : vector<1x8xf32> to vector<1x8x1xf32>
    %c0_18 = arith.constant 0 : index
    %c0_19 = arith.constant 0 : index
    %c0_20 = arith.constant 0 : index
    %19 = vector.load %arg4[%c0_18, %c0_19, %c0_20] : memref<1x8x512xf32, #tpu.memory_space<vmem>>, vector<1x8x128xf32>
    "tpu.trace_start"() <{level = 10 : i32, message = "bts,bsc->btc"}> : () -> ()
    %cst_21 = arith.constant dense<0.000000e+00> : vector<1x8x128xf32>
    %20 = tpu.matmul %16, %19, %cst_21 {dimension_numbers = #tpu.dot_dimension_numbers<[2], [1], [1], [2], [0, 0, 0, 1, 1, 2], [0], [0]>} : vector<1x8x8xf32>, vector<1x8x128xf32>, vector<1x8x128xf32> -> vector<1x8x128xf32>
    "tpu.trace_stop"() : () -> ()
    %c0_22 = arith.constant 0 : index
    %c0_23 = arith.constant 0 : index
    %c0_24 = arith.constant 0 : index
    %21 = vector.load %arg5[%c0_22, %c0_23, %c0_24] : memref<1x8x128xf32, #tpu.memory_space<vmem>>, vector<1x8x128xf32>
    %cst_25 = arith.constant 1.000000e+00 : f32
    %22 = vector.broadcast %cst_25 : f32 to vector<1x8x1xf32>
    %23 = arith.divf %22, %18 : vector<1x8x1xf32>
    %24 = vector.broadcast %23 : vector<1x8x1xf32> to vector<1x8x128xf32>
    %25 = arith.mulf %20, %24 : vector<1x8x128xf32>
    %26 = arith.addf %21, %25 : vector<1x8x128xf32>
    %c0_26 = arith.constant 0 : index
    %c0_27 = arith.constant 0 : index
    %c0_28 = arith.constant 0 : index
    %27 = vector.load %arg5[%c0_26, %c0_27, %c0_28] : memref<1x8x128xf32, #tpu.memory_space<vmem>>, vector<1x8x128xf32>
    tpu.vector_store %arg5[%c0_26, %c0_27, %c0_28], %26 {strides = array<i32>} : memref<1x8x128xf32, #tpu.memory_space<vmem>>, vector<1x8x128xf32>,
    %c0_29 = arith.constant 0 : index
    %c0_30 = arith.constant 0 : index
    %c8 = arith.constant 8 : index
    %28 = vector.load %arg1[%c0_29, %c0_30, %c8] : memref<1x8x32xf32, #tpu.memory_space<vmem>>, vector<1x8x8xf32>
    %cst_31 = arith.constant 0.353553385 : f32
    %29 = vector.broadcast %cst_31 : f32 to vector<1x8x8xf32>
    %30 = arith.mulf %28, %29 : vector<1x8x8xf32>
    "tpu.trace_start"() <{level = 10 : i32, message = "btk,bsk->bts"}> : () -> ()
    %cst_32 = arith.constant dense<0.000000e+00> : vector<1x8x8xf32>
    %31 = tpu.matmul %30, %28, %cst_32 {dimension_numbers = #tpu.dot_dimension_numbers<[2], [2], [1], [1], [0, 0, 0, 1, 1, 1], [0], [0]>} : vector<1x8x8xf32>, vector<1x8x8xf32>, vector<1x8x8xf32> -> vector<1x8x8xf32>
    "tpu.trace_stop"() : () -> ()
    %cst_33 = arith.constant dense<0xFF800000> : vector<1x8xf32>
    %32 = vector.multi_reduction <maximumf>, %31, %cst_33 [2] : vector<1x8x8xf32> to vector<1x8xf32>
    %33 = vector.shape_cast %32 : vector<1x8xf32> to vector<1x8x1xf32>
    %34 = vector.broadcast %33 : vector<1x8x1xf32> to vector<1x8x8xf32>
    %35 = arith.subf %31, %34 : vector<1x8x8xf32>
    %36 = math.exp %35 : vector<1x8x8xf32>
    %cst_34 = arith.constant dense<0.000000e+00> : vector<1x8xf32>
    %37 = vector.multi_reduction <add>, %36, %cst_34 [2] : vector<1x8x8xf32> to vector<1x8xf32>
    %38 = vector.shape_cast %37 : vector<1x8xf32> to vector<1x8x1xf32>
    %c0_35 = arith.constant 0 : index
    %c0_36 = arith.constant 0 : index
    %c128 = arith.constant 128 : index
    %39 = vector.load %arg4[%c0_35, %c0_36, %c128] : memref<1x8x512xf32, #tpu.memory_space<vmem>>, vector<1x8x128xf32>
    "tpu.trace_start"() <{level = 10 : i32, message = "bts,bsc->btc"}> : () -> ()
    %cst_37 = arith.constant dense<0.000000e+00> : vector<1x8x128xf32>
    %40 = tpu.matmul %36, %39, %cst_37 {dimension_numbers = #tpu.dot_dimension_numbers<[2], [1], [1], [2], [0, 0, 0, 1, 1, 2], [0], [0]>} : vector<1x8x8xf32>, vector<1x8x128xf32>, vector<1x8x128xf32> -> vector<1x8x128xf32>
    "tpu.trace_stop"() : () -> ()
    %c0_38 = arith.constant 0 : index
    %c0_39 = arith.constant 0 : index
    %c0_40 = arith.constant 0 : index
    %41 = vector.load %arg5[%c0_38, %c0_39, %c0_40] : memref<1x8x128xf32, #tpu.memory_space<vmem>>, vector<1x8x128xf32>
    %cst_41 = arith.constant 1.000000e+00 : f32
    %42 = vector.broadcast %cst_41 : f32 to vector<1x8x1xf32>
    %43 = arith.divf %42, %38 : vector<1x8x1xf32>
    %44 = vector.broadcast %43 : vector<1x8x1xf32> to vector<1x8x128xf32>
    %45 = arith.mulf %40, %44 : vector<1x8x128xf32>
    %46 = arith.addf %41, %45 : vector<1x8x128xf32>
    %c0_42 = arith.constant 0 : index
    %c0_43 = arith.constant 0 : index
    %c0_44 = arith.constant 0 : index
    %47 = vector.load %arg5[%c0_42, %c0_43, %c0_44] : memref<1x8x128xf32, #tpu.memory_space<vmem>>, vector<1x8x128xf32>
    tpu.vector_store %arg5[%c0_42, %c0_43, %c0_44], %46 {strides = array<i32>} : memref<1x8x128xf32, #tpu.memory_space<vmem>>, vector<1x8x128xf32>,
    %c0_45 = arith.constant 0 : index
    %c0_46 = arith.constant 0 : index
    %c16 = arith.constant 16 : index
    %48 = vector.load %arg1[%c0_45, %c0_46, %c16] : memref<1x8x32xf32, #tpu.memory_space<vmem>>, vector<1x8x8xf32>
    %cst_47 = arith.constant 0.353553385 : f32
    %49 = vector.broadcast %cst_47 : f32 to vector<1x8x8xf32>
    %50 = arith.mulf %48, %49 : vector<1x8x8xf32>
    "tpu.trace_start"() <{level = 10 : i32, message = "btk,bsk->bts"}> : () -> ()
    %cst_48 = arith.constant dense<0.000000e+00> : vector<1x8x8xf32>
    %51 = tpu.matmul %50, %48, %cst_48 {dimension_numbers = #tpu.dot_dimension_numbers<[2], [2], [1], [1], [0, 0, 0, 1, 1, 1], [0], [0]>} : vector<1x8x8xf32>, vector<1x8x8xf32>, vector<1x8x8xf32> -> vector<1x8x8xf32>
    "tpu.trace_stop"() : () -> ()
    %cst_49 = arith.constant dense<0xFF800000> : vector<1x8xf32>
    %52 = vector.multi_reduction <maximumf>, %51, %cst_49 [2] : vector<1x8x8xf32> to vector<1x8xf32>
    %53 = vector.shape_cast %52 : vector<1x8xf32> to vector<1x8x1xf32>
    %54 = vector.broadcast %53 : vector<1x8x1xf32> to vector<1x8x8xf32>
    %55 = arith.subf %51, %54 : vector<1x8x8xf32>
    %56 = math.exp %55 : vector<1x8x8xf32>
    %cst_50 = arith.constant dense<0.000000e+00> : vector<1x8xf32>
    %57 = vector.multi_reduction <add>, %56, %cst_50 [2] : vector<1x8x8xf32> to vector<1x8xf32>
    %58 = vector.shape_cast %57 : vector<1x8xf32> to vector<1x8x1xf32>
    %c0_51 = arith.constant 0 : index
    %c0_52 = arith.constant 0 : index
    %c256 = arith.constant 256 : index
    %59 = vector.load %arg4[%c0_51, %c0_52, %c256] : memref<1x8x512xf32, #tpu.memory_space<vmem>>, vector<1x8x128xf32>
    "tpu.trace_start"() <{level = 10 : i32, message = "bts,bsc->btc"}> : () -> ()
    %cst_53 = arith.constant dense<0.000000e+00> : vector<1x8x128xf32>
    %60 = tpu.matmul %56, %59, %cst_53 {dimension_numbers = #tpu.dot_dimension_numbers<[2], [1], [1], [2], [0, 0, 0, 1, 1, 2], [0], [0]>} : vector<1x8x8xf32>, vector<1x8x128xf32>, vector<1x8x128xf32> -> vector<1x8x128xf32>
    "tpu.trace_stop"() : () -> ()
    %c0_54 = arith.constant 0 : index
    %c0_55 = arith.constant 0 : index
    %c0_56 = arith.constant 0 : index
    %61 = vector.load %arg5[%c0_54, %c0_55, %c0_56] : memref<1x8x128xf32, #tpu.memory_space<vmem>>, vector<1x8x128xf32>
    %cst_57 = arith.constant 1.000000e+00 : f32
    %62 = vector.broadcast %cst_57 : f32 to vector<1x8x1xf32>
    %63 = arith.divf %62, %58 : vector<1x8x1xf32>
    %64 = vector.broadcast %63 : vector<1x8x1xf32> to vector<1x8x128xf32>
    %65 = arith.mulf %60, %64 : vector<1x8x128xf32>
    %66 = arith.addf %61, %65 : vector<1x8x128xf32>
    %c0_58 = arith.constant 0 : index
    %c0_59 = arith.constant 0 : index
    %c0_60 = arith.constant 0 : index
    %67 = vector.load %arg5[%c0_58, %c0_59, %c0_60] : memref<1x8x128xf32, #tpu.memory_space<vmem>>, vector<1x8x128xf32>
    tpu.vector_store %arg5[%c0_58, %c0_59, %c0_60], %66 {strides = array<i32>} : memref<1x8x128xf32, #tpu.memory_space<vmem>>, vector<1x8x128xf32>,
    %c0_61 = arith.constant 0 : index
    %c0_62 = arith.constant 0 : index
    %c24 = arith.constant 24 : index
    %68 = vector.load %arg1[%c0_61, %c0_62, %c24] : memref<1x8x32xf32, #tpu.memory_space<vmem>>, vector<1x8x8xf32>
    %cst_63 = arith.constant 0.353553385 : f32
    %69 = vector.broadcast %cst_63 : f32 to vector<1x8x8xf32>
    %70 = arith.mulf %68, %69 : vector<1x8x8xf32>
    "tpu.trace_start"() <{level = 10 : i32, message = "btk,bsk->bts"}> : () -> ()
    %cst_64 = arith.constant dense<0.000000e+00> : vector<1x8x8xf32>
    %71 = tpu.matmul %70, %68, %cst_64 {dimension_numbers = #tpu.dot_dimension_numbers<[2], [2], [1], [1], [0, 0, 0, 1, 1, 1], [0], [0]>} : vector<1x8x8xf32>, vector<1x8x8xf32>, vector<1x8x8xf32> -> vector<1x8x8xf32>
    "tpu.trace_stop"() : () -> ()
    %cst_65 = arith.constant dense<0xFF800000> : vector<1x8xf32>
    %72 = vector.multi_reduction <maximumf>, %71, %cst_65 [2] : vector<1x8x8xf32> to vector<1x8xf32>
    %73 = vector.shape_cast %72 : vector<1x8xf32> to vector<1x8x1xf32>
    %74 = vector.broadcast %73 : vector<1x8x1xf32> to vector<1x8x8xf32>
    %75 = arith.subf %71, %74 : vector<1x8x8xf32>
    %76 = math.exp %75 : vector<1x8x8xf32>
    %cst_66 = arith.constant dense<0.000000e+00> : vector<1x8xf32>
    %77 = vector.multi_reduction <add>, %76, %cst_66 [2] : vector<1x8x8xf32> to vector<1x8xf32>
    %78 = vector.shape_cast %77 : vector<1x8xf32> to vector<1x8x1xf32>
    %c0_67 = arith.constant 0 : index
    %c0_68 = arith.constant 0 : index
    %c384 = arith.constant 384 : index
    %79 = vector.load %arg4[%c0_67, %c0_68, %c384] : memref<1x8x512xf32, #tpu.memory_space<vmem>>, vector<1x8x128xf32>
    "tpu.trace_start"() <{level = 10 : i32, message = "bts,bsc->btc"}> : () -> ()
    %cst_69 = arith.constant dense<0.000000e+00> : vector<1x8x128xf32>
    %80 = tpu.matmul %76, %79, %cst_69 {dimension_numbers = #tpu.dot_dimension_numbers<[2], [1], [1], [2], [0, 0, 0, 1, 1, 2], [0], [0]>} : vector<1x8x8xf32>, vector<1x8x128xf32>, vector<1x8x128xf32> -> vector<1x8x128xf32>
    "tpu.trace_stop"() : () -> ()
    %c0_70 = arith.constant 0 : index
    %c0_71 = arith.constant 0 : index
    %c0_72 = arith.constant 0 : index
    %81 = vector.load %arg5[%c0_70, %c0_71, %c0_72] : memref<1x8x128xf32, #tpu.memory_space<vmem>>, vector<1x8x128xf32>
    %cst_73 = arith.constant 1.000000e+00 : f32
    %82 = vector.broadcast %cst_73 : f32 to vector<1x8x1xf32>
    %83 = arith.divf %82, %78 : vector<1x8x1xf32>
    %84 = vector.broadcast %83 : vector<1x8x1xf32> to vector<1x8x128xf32>
    %85 = arith.mulf %80, %84 : vector<1x8x128xf32>
    %86 = arith.addf %81, %85 : vector<1x8x128xf32>
    %c0_74 = arith.constant 0 : index
    %c0_75 = arith.constant 0 : index
    %c0_76 = arith.constant 0 : index
    %87 = vector.load %arg5[%c0_74, %c0_75, %c0_76] : memref<1x8x128xf32, #tpu.memory_space<vmem>>, vector<1x8x128xf32>
    tpu.vector_store %arg5[%c0_74, %c0_75, %c0_76], %86 {strides = array<i32>} : memref<1x8x128xf32, #tpu.memory_space<vmem>>, vector<1x8x128xf32>,
    %c0_77 = arith.constant 0 : index
    %c0_78 = arith.constant 0 : index
    %c0_79 = arith.constant 0 : index
    %88 = vector.load %arg5[%c0_77, %c0_78, %c0_79] : memref<1x8x128xf32, #tpu.memory_space<vmem>>, vector<1x8x128xf32>
    %c0_80 = arith.constant 0 : index
    %c0_81 = arith.constant 0 : index
    %c0_82 = arith.constant 0 : index
    %89 = vector.load %arg3[%c0_80, %c0_81, %c0_82] : memref<1x8x128xf32, #tpu.memory_space<vmem>>, vector<1x8x128xf32>
    tpu.vector_store %arg3[%c0_80, %c0_81, %c0_82], %88 {strides = array<i32>} : memref<1x8x128xf32, #tpu.memory_space<vmem>>, vector<1x8x128xf32>,
    return
  }
  func.func @transform_0(%arg0: i32) -> (i32, i32, i32) {
    %c0_i32 = arith.constant 0 : i32
    %c0_i32_0 = arith.constant 0 : i32
    %c0_i32_1 = arith.constant 0 : i32
    return %arg0, %c0_i32, %c0_i32_0 : i32, i32, i32
  }
  func.func @transform_1(%arg0: i32) -> (i32, i32) {
    %c0_i32 = arith.constant 0 : i32
    %c0_i32_0 = arith.constant 0 : i32
    %c0_i32_1 = arith.constant 0 : i32
    return %c0_i32, %c0_i32_0 : i32, i32
  }
  func.func @transform_2(%arg0: i32) -> (i32, i32, i32) {
    %c0_i32 = arith.constant 0 : i32
    %c0_i32_0 = arith.constant 0 : i32
    %c0_i32_1 = arith.constant 0 : i32
    return %arg0, %c0_i32, %c0_i32_0 : i32, i32, i32
  }
}

</mosaic_0001>

<bundles_post_ra>
// kernel: tpu_custom_call.1
= control target key start
LH: loop header
LB: loop body
LE: loop exit
PB: predicated region body
PF: predicated region fallthrough
CT: control target
= control target key end

     0   :  { %7 = vsyncpa [#allocation5], 0  ;;  %s1702_s0 = inlined_call_operand.hbm [shape: f32[2,8,32], index: 0, kind: input, shape index: {}]   ;;  %s1703_s1 = inlined_call_operand.hbm [shape: f32[32,512], index: 1, kind: input, shape index: {}]   ;;  %s1704_s2 = inlined_call_operand.hbm [shape: f32[2,8,128], index: 2, kind: output, shape index: {}]  }
   0x1   :  { %9 = vsyncpa [#allocation5 + $0x1], 0 }
   0x2   :  { %10 = vsyncpa [#allocation8], 0 }
   0x3   :  { %11 = vsyncpa [#allocation6], 0 }
   0x4   :  { %13 = vsyncpa [#allocation6 + $0x1], 0  ;;  %s1454_s9 = smov 0   ;;  %s1456_s10 = smov 0  }
   0x5   :  { %s1458_s11 = smov 0   ;;  %s1460_s12 = smov 0  }
   0x6 LB: > { %s1475_s13 = sadd.s32 4294967295, %s1427_s12   ;;  %s1119_s14 = sadd.s32 4294967294, %s1427_s12   ;;  %s1427_s12 = sphi %s1460_s12, %s1724_s12   ;;  %s1423_s11 = sphi %s1458_s11, %s1723_s11   ;;  %s1419_s10 = sphi %s1456_s10, %s1722_s10   ;;  %s1415_s9 = sphi %s1454_s9, %s1721_s9  }
   0x7   : > { %p39_p0 = scmp.ne.s32.totalorder %s1419_s10, %s1415_s9  ;;  %p1705_p1 = scmp.eq.s32.totalorder %s1475_s13, 0 }
   0x8   : > { %p90_p3 = scmp.eq.s32.totalorder %s1119_s14, 1  ;;  %p1120_p5 = scmp.ge.s32.totalorder %s1427_s12, 1 }
   0x9   : > { %p1484_p4 = por %p1705_p1, %p39_p0  ;;  %p97_p7 = scmp.lt.s32.totalorder %s1427_s12, 3 }
   0xa   : > { %p1489_p6 = por %p90_p3, %p39_p0  ;;  %s1429_s18 = smov [#allocation7]  }
   0xb   : > { %s1708_s15 = scalar_select %p1484_p4, 1, 0 }
   0xc   : > { %s1709_s16 = scalar_select %p1489_p6, 1, 0 }
   0xd   : > { %p1494_p8 = pnand %p1120_p5, %p97_p7  ;;  %s109_s19 = sshll.u32 %s1429_s18, 4  ;;  %s1498_s19 = int_to_ptr.vmem [resolvable:$true] %s109_s19 }
   0xe   : > { %s1510_s21 = sadd.s32 1, %s1427_s12   ;;  %s26_s22 = sadd.s32 1, %s1423_s11 }
   0xf   : > { %s1710_s17 = scalar_select %p1494_p8, 1, 0 }
  0x10   : > { %p1227_p9 = pneg %p1494_p8  ;;  %s23_s23 = ssub.s32 %s1427_s12, %s1510_s21 }
  0x11   : > { %s1299_s26 = scalar_lea.hbm %s1703_s1, 2048 }
  0x12   : > { %p1505_p11 = pnand %p1227_p9, %p1705_p1  ;;  %p1300_p12 = scmp.ne.s32.totalorder %s1703_s1, %s1299_s26 }
  0x13   : > { %p1306_p5 = scmp.lt.u32.totalorder %s1299_s26, %s1703_s1 }
  0x14   : > { %p1301_p13 = pneg %p1505_p11 }
  0x16   : > { %p1302_p0 = pnand %p1301_p13, %p1300_p12 }
  0x18   : > { %p1303_p3 = pneg %p1302_p0 }
  0x1a   : > { %p1308_p7 = pnand %p1306_p5, %p1303_p3 }
  0x1c   : > { %1311 = shalt.err (!%p1308_p7)
}
  0x1d   : > { %s1312_s3 = scalar_lea.vmem %s1498_s19, 2048  ;;  %p1320_p2 = scmp.lt.s32.totalorder %s1498_s19, %s1498_s19 }
  0x1e   : > { %p1313_p9 = scmp.ne.s32.totalorder %s1498_s19, %s1312_s3  ;;  %p1321_p6 = scmp.lt.s32.totalorder %s1312_s3, %s1312_s3 }
  0x20   : > { %p1315_p10 = pnand %p1313_p9, %p1301_p13  ;;  %p1322_p4 = por %p1321_p6, %p1320_p2 }
  0x22   : > { %p1316_p1 = pneg %p1315_p10 }
  0x24   : > { %p1323_p8 = pnand %p1322_p4, %p1316_p1 }
  0x26   : > { %1326 = shalt.err (!%p1323_p8)
}
  0x27   : > { %s1430_s4 = smov 512   ;;  %s1431_s5 = smov 32  }
  0x28   : > { %1230 = dma.hbm_to_vmem [thread:$0]  (!%p1505_p11), %s1703_s1, 2048, %s1498_s19, [#allocation8], %s1430_s4, %s1430_s4, %s1431_s5  }
  0x29   : > { %p24_p2 = scmp.eq.s32.totalorder %s23_s23, 0  ;;  %p33_p1 = scmp.ne.s32.totalorder %s1423_s11, %s1419_s10 }
  0x2a   : > { %p34_p4 = scmp.eq.s32.totalorder %s1427_s12, 0  ;;  %p1240_p6 = scmp.lt.s32.totalorder %s1427_s12, 2 }
  0x2b   : > { %s1541_s8 = scalar_select %p24_p2, %s1423_s11, %s26_s22  }
  0x2c   : > { %p35_p8 = por %p34_p4, %p33_p1  ;;  %p1712_p10 = scmp.eq.s32.totalorder %s1475_s13, 1 }
  0x2d   : > { %s123_s18 = sand.u32 1, %s1423_s11   ;;  %s1124_s24 = sshll.u32 %s1427_s12, 7 }
  0x2e   : > { %p1545_p12 = por %p1712_p10, %p33_p1  ;;  %s1123_s25 = sshll.u32 %s123_s18, 3 }
  0x2f   : > { %s1554_s27 = scalar_lea.hbm %s1702_s0, %s1124_s24  ;;  %s127_s19 = scalar_lea.vmem [#allocation4], %s1123_s25 }
  0x30   : > { %s134_s22 = sshll.u32 %s127_s19, 4  ;;  %p1556_p11 = pnand %p1240_p6, %p35_p8  ;;  %s1560_s22 = int_to_ptr.vmem [resolvable:$true] %s134_s22 }
  0x31   : > { %s124_s28 = scalar_lea.sflag [#allocation5], %s123_s18  ;;  %s1327_s29 = scalar_lea.hbm %s1554_s27, 128 }
  0x32   : > { %p1328_p13 = scmp.ne.s32.totalorder %s1554_s27, %s1327_s29  ;;  %p1329_p0 = pneg %p1556_p11 }
  0x33   : > { %s1332_s4 = scalar_lea.hbm %s1702_s0, 256  ;;  %p1333_p7 = scmp.lt.u32.totalorder %s1554_s27, %s1702_s0 }
  0x34   : > { %p1330_p3 = pnand %p1329_p0, %p1328_p13  ;;  %p1334_p9 = scmp.lt.u32.totalorder %s1332_s4, %s1327_s29 }
  0x35   : > { %p1336_p1 = scmp.lt.u32.totalorder %s1327_s29, %s1554_s27 }
  0x36   : > { %p1331_p5 = pneg %p1330_p3  ;;  %p1335_p2 = por %p1334_p9, %p1333_p7 }
  0x38   : > { %p1337_p4 = por %p1336_p1, %p1335_p2 }
  0x3a   : > { %p1338_p6 = pnand %p1337_p4, %p1331_p5 }
  0x3c   : > { %1341 = shalt.err (!%p1338_p6)
}
  0x3d   : > { %s1342_s7 = scalar_lea.vmem %s1560_s22, 128  ;;  %s1432_s18 = smov [#allocation4]  }
  0x3e   : > { %p1343_p8 = scmp.ne.s32.totalorder %s1560_s22, %s1342_s7  ;;  %s1347_s24 = sshll.u32 %s1432_s18, 4  ;;  %s1348_s24 = int_to_ptr.vmem [resolvable:$false] %s1347_s24 }
  0x3f   : > { %s1349_s25 = scalar_lea.vmem %s1348_s24, 256  ;;  %p1350_p3 = scmp.lt.s32.totalorder %s1560_s22, %s1348_s24 }
  0x40   : > { %p1345_p10 = pnand %p1343_p8, %p1329_p0  ;;  %p1351_p7 = scmp.lt.s32.totalorder %s1349_s25, %s1342_s7 }
  0x42   : > { %p1346_p13 = pneg %p1345_p10  ;;  %p1352_p9 = por %p1351_p7, %p1350_p3 }
  0x44   : > { %p1353_p2 = pnand %p1352_p9, %p1346_p13 }
  0x46   : > { %1356 = shalt.err (!%p1353_p2)
}
  0x47   : > { %1234 = dma.hbm_to_vmem [thread:$0]  (!%p1556_p11), %s1554_s27, 128, %s1560_s22, %s124_s28  }
  0x48   : > { %p1715_p5 = scmp.ne.s32.totalorder %s1710_s17, 0 }
  0x49   : > { %s1590_s20 = sand.u32 (!%p1715_p5), 1, %s1419_s10   ;;  %p1716_p0 = scmp.ne.s32.totalorder (!%p1715_p5), %s1708_s15, 0 }
  0x4a   : > { %143 = sbr.rel (%p1715_p5) target bundleno = 814 (0x32e), region = 28  ;;  %s1126_s26 = sshll.u32 (!%p1715_p5), %s1590_s20, 3 }
  0x4b   : > { %s146_s19 = scalar_lea.sflag (!%p1715_p5), [#allocation5], %s1590_s20  ;;  %s149_s29 = scalar_lea.vmem (!%p1715_p5), [#allocation4], %s1126_s26 }
  0x51   : > { %1402 = dma.done.wait (%p1716_p0), %s146_s19, 128  }
  0x52   : > { %1404 = vsyncadd (%p1716_p0), %s146_s19, 4294967168  ;;  %p1717_p11 = scmp.eq.s32.totalorder %s1475_s13, 0 }
  0x54   : > { %1406 = dma.done.wait (%p1717_p11), [#allocation8], 2048   ;;  %p1718_p1 = pmov %p1717_p11 }
  0x55   : > { %v1433_v0 = vmov 0.0   ;;  %v510_v1 = vld [vmem:[%s149_s29] sm:$0xff]  ;;  %v176_v2 = vld [vmem:[#allocation7 + $0x8] sm:$0xff]  ;;  %s1434_s17 = smov 120   ;;  %v175_v6 = vld [vmem:[#allocation7] sm:$0xff]  ;;  %s1435_s15 = smov 112  }
  0x56   : > { %1408 = vsyncadd (%p1718_p1), [#allocation8], 4294965248  ;;  %259 = vmatprep.mubr.f32.mxu0 %v1433_v0  ;;  %330 = vmatprep.mubr.f32.mxu1 %v1433_v0  ;;  %v180_v3 = vld [vmem:[#allocation7 + $0x28] sm:$0xff]  ;;  %v511_v4 = vmul.f32 0.35355338, %v510_v1  ;;  %v179_v7 = vld [vmem:[#allocation7 + $0x20] sm:$0xff] }
  0x57   : > { %516 = vrot.lane.b32.xlu0 %v510_v1, %s1434_s17  ;;  %v1203_v5 = vpack.c.bf16 %v180_v3, %v176_v2  ;;  %687 = vrot.lane.b32.xlu1 %v510_v1, %s1435_s15  ;;  %v184_v8 = vld [vmem:[#allocation7 + $0x48] sm:$0xff]  ;;  %v1205_v9 = vpack.c.bf16 %v179_v7, %v175_v6  ;;  %v183_v11 = vld [vmem:[#allocation7 + $0x40] sm:$0xff]  ;;  %vm191_vm0 = vcmask 261120   ;;  %s1436_s27 = smov 104   ;;  %vm1437_vm1 = vmmov 0   ;;  %v178_v15 = vld [vmem:[#allocation7 + $0x18] sm:$0xff] }
  0x58   : > { %v188_v10 = vld [vmem:[#allocation7 + $0x68] sm:$0xff]  ;;  %v187_v12 = vld [vmem:[#allocation7 + $0x60] sm:$0xff]  ;;  %vm344_vm2 = vcmask 64512   ;;  %v182_v16 = vld [vmem:[#allocation7 + $0x38] sm:$0xff]  ;;  %s1144_s22 = sshll.u32 %s1475_s13, 7  ;;  %s173_s23 = scalar_lea.vmem [#allocation9], %s1126_s26 }
  0x59   : > { %1204 = vmatprep.subr.bf16.mxu0 %v1203_v5  ;;  %v1207_v13 = vpack.c.bf16 %v188_v10, %v184_v8  ;;  %v1209_v14 = vpack.c.bf16 %v187_v12, %v183_v11  ;;  %v177_v17 = vld [vmem:[#allocation7 + $0x10] sm:$0xff]  ;;  %v1211_v18 = vpack.c.bf16 %v182_v16, %v178_v15  ;;  %v186_v20 = vld [vmem:[#allocation7 + $0x58] sm:$0xff]  ;;  %s1039_s28 = sshll.u32 %s173_s23, 4  ;;  %s1658_s4 = scalar_lea.hbm %s1704_s2, %s1144_s22  ;;  %s1660_s28 = int_to_ptr.vmem [resolvable:$true] %s1039_s28 }
  0x5a   : > { %1206 = vmatpush1.bf16.msra.mxu0 %v1205_v9  ;;  %v181_v19 = vld [vmem:[#allocation7 + $0x30] sm:$0xff]  ;;  %v190_v21 = vld [vmem:[#allocation7 + $0x78] sm:$0xff]  ;;  %s1026_s5 = scalar_lea.sflag [#allocation6], %s1590_s20  ;;  %s1357_s6 = scalar_lea.vmem %s1660_s28, 128 }
  0x5b   : > { %513 = vrot.lane.b32.xlu0 %v511_v4, %s1434_s17  ;;  %1208 = vmatprep.subr.bf16.mxu0 %v1207_v13  ;;  %v1213_v22 = vpack.c.bf16 %v181_v19, %v177_v17  ;;  %v1215_v23 = vpack.c.bf16 %v190_v21, %v186_v20  ;;  %v185_v24 = vld [vmem:[#allocation7 + $0x50] sm:$0xff]  ;;  %p1358_p4 = scmp.ne.s32.totalorder %s1660_s28, %s1357_s6  ;;  %s1438_s13 = smov [#allocation9]  }
  0x5c   : > { %684 = vrot.lane.b32.xlu1 %v511_v4, %s1435_s15  ;;  %v189_v25 = vld [vmem:[#allocation7 + $0x70] sm:$0xff]  ;;  %1212 = vmatprep.subr.bf16.mxu1 %v1211_v18  ;;  %s1361_s7 = sshll.u32 %s1438_s13, 4  ;;  %s1362_s7 = int_to_ptr.vmem [resolvable:$false] %s1361_s7 }
  0x5d   : > { %1214 = vmatpush1.bf16.msra.mxu1 %v1213_v22  ;;  %v1217_v26 = vpack.c.bf16 %v189_v25, %v185_v24  ;;  %p1359_p6 = pnand %p1358_p4, %p1545_p12  ;;  %s1363_s18 = scalar_lea.vmem %s1362_s7, 256 }
  0x5e   : > { %1210 = vmatpush1.bf16.msra.mxu0 %v1209_v14  ;;  %1216 = vmatprep.subr.bf16.mxu1 %v1215_v23  ;;  %p1364_p10 = scmp.lt.s32.totalorder %s1660_s28, %s1362_s7  ;;  %p1365_p13 = scmp.lt.s32.totalorder %s1363_s18, %s1357_s6 }
  0x5f   : > { %858 = vrot.lane.b32.xlu0 %v510_v1, %s1436_s27  ;;  %1163 = vmatprep.subr.mxu0 %v1433_v0  ;;  %p1360_p8 = pneg %p1359_p6 }
  0x60   : > { %855 = vrot.lane.b32.xlu1 %v511_v4, %s1436_s27  ;;  %p1366_p3 = por %p1365_p13, %p1364_p10 }
  0x61   : > { %1129 = vmatmul.mubr.msk.f32.vlgmr.msra.gmra.mrb[0].mxu0 %vm191_vm0, %v510_v1  ;;  %1218 = vmatpush1.bf16.msra.mxu1 %v1217_v26 }
  0x62   : > { %1165 = vmatprep.mubr.msk.f32.mxu0 %vm1437_vm1, %v1433_v0  ;;  %1168 = vmatprep.subr.mxu1 %v1433_v0  ;;  %p1367_p7 = pnand %p1366_p3, %p1360_p8 }
  0x64   : > { %1130 = vmatmul.mubr.msk.f32.vlgmr.msra.gmra.mrb[0].mxu1 %vm191_vm0, %v510_v1 }
  0x65   : > { %1170 = vmatprep.mubr.msk.f32.mxu1 %vm1437_vm1, %v1433_v0 }
  0x67   : > { %1164 = vmatpush3.xpose.msk.msra.mxu0 %vm344_vm2, %v510_v1 }
  0x68   : > { %1173 = vmatprep.subr.mxu0 %v1433_v0 }
  0x6a   : > { %1166 = vmatmul.mubr.msk.f32.vlgmr.msra.gmra.mrb[2].mxu0 %vm344_vm2, %v511_v4 }
  0x6b   : > { %1175 = vmatprep.mubr.msk.f32.mxu0 %vm1437_vm1, %v1433_v0 }
  0xc9   : > { %v517_v27 = vpop.permute.xlu0 %516  ;;  %v688_v28 = vpop.permute.xlu1 %687 }
  0xca   : > { %1174 = vmatpush3.xpose.msk.msra.mxu0 %vm344_vm2, %v517_v27 }
  0xcb   : > { %1183 = vmatprep.subr.mxu0 %v1433_v0 }
  0xcd   : > { %v514_v29 = vpop.permute.xlu0 %513 }
  0xce   : > { %1176 = vmatmul.mubr.msk.f32.vlgmr.msra.gmra.mrb[4].mxu0 %vm344_vm2, %v514_v29  ;;  %v685_v30 = vpop.permute.xlu1 %684 }
  0xcf   : > { %1184 = vmatpush3.xpose.msk.msra.mxu0 %vm344_vm2, %v688_v28  ;;  %1185 = vmatprep.mubr.msk.f32.mxu0 %vm1437_vm1, %v1433_v0 }
  0xd0   : > { %1193 = vmatprep.subr.mxu0 %v1433_v0 }
  0xd1   : > { %v859_v31 = vpop.permute.xlu0 %858 }
  0xd2   : > { %1186 = vmatmul.mubr.msk.f32.vlgmr.msra.gmra.mrb[6].mxu0 %vm344_vm2, %v685_v30  ;;  %v856_v32 = vpop.permute.xlu1 %855 }
  0xd3   : > { %1194 = vmatpush3.xpose.msk.msra.mxu0 %vm344_vm2, %v859_v31  ;;  %1195 = vmatprep.mubr.msk.f32.mxu0 %vm1437_vm1, %v1433_v0 }
  0xd6   : > { %1196 = vmatmul.mubr.msk.f32.vlgmr.msra.gmra.mrb[8].mxu0 %vm344_vm2, %v856_v32 }
 0x134   : > { %v261_v33 = vpop.f32.mrb[0].mxu0 }
 0x135   : > { %v263_v34 = vpop.f32.mrb[1].mxu0  ;;  %1169 = vmatpush3.msra.mxu1 %v261_v33 }
 0x136   : > { %1178 = vmatprep.subr.mxu1 %v1433_v0 }
 0x137   : > { %v332_v47 = vpop.f32.mrb[0].mxu1 }
 0x138   : > { %v334_v48 = vpop.f32.mrb[1].mxu1 }
 0x13d   : > { %v417_v35 = vpop.f32.mrb[2].mxu0 }
 0x13e   : > { %v421_v36 = vsel %vm344_vm2, %v417_v35, -inf  ;;  %v1167_v37 = vpop.f32.mrb[3].mxu0 }
 0x13f   : > { %422 = vmax.xlane.f32.xlu0 %v421_v36 }
 0x1a1   : > { %v588_v38 = vpop.f32.mrb[4].mxu0 }
 0x1a2   : > { %v1177_v39 = vpop.f32.mrb[5].mxu0  ;;  %v592_v40 = vsel %vm344_vm2, %v588_v38, -inf }
 0x1a3   : > { %593 = vmax.xlane.f32.xlu1 %v592_v40 }
 0x1a5   : > { %v759_v41 = vpop.f32.mrb[6].mxu0 }
 0x1a6   : > { %v1187_v42 = vpop.f32.mrb[7].mxu0  ;;  %v763_v43 = vsel %vm344_vm2, %v759_v41, -inf }
 0x1a7   : > { %764 = vmax.xlane.f32.xlu0 %v763_v43 }
 0x1a9   : > { %v930_v44 = vpop.f32.mrb[8].mxu0 }
 0x1aa   : > { %v1197_v45 = vpop.f32.mrb[9].mxu0  ;;  %v934_v46 = vsel %vm344_vm2, %v930_v44, -inf }
 0x1ab   : > { %935 = vmax.xlane.f32.xlu0 %v934_v46 }
 0x1cc   : > { %v423_v49 = vpop.xlane.xlu0 %422 }
 0x1cd   : > { %v424_v50 = vsub.f32 %v417_v35, %v423_v49 }
 0x1cf   : > { %v425_v51 = vmul.f32 1.442695, %v424_v50 }
 0x1d1   : > { %1283 = vpow2.f32 %v425_v51 }
 0x1db   : > { %v1284_v52 = vpop.eup %1283 }
 0x1dc   : > { %1171 = vmatmul.mubr.msk.f32.vlgmr.msra.gmra.mrb[2].mxu1 %vm344_vm2, %v1284_v52  ;;  %v427_v53 = vsel %vm344_vm2, %v1284_v52, 0.0 }
 0x1dd   : > { %1179 = vmatpush3.msra.mxu1 %v263_v34  ;;  %428 = vadd.xlane.f32.xlu1 %v427_v53 }
 0x1de   : > { %1180 = vmatprep.mubr.msk.f32.mxu1 %vm1437_vm1, %v1433_v0  ;;  %1188 = vmatprep.subr.mxu1 %v1433_v0 }
 0x230   : > { %v594_v54 = vpop.xlane.xlu1 %593 }
 0x231   : > { %v595_v55 = vsub.f32 %v588_v38, %v594_v54 }
 0x233   : > { %v596_v56 = vmul.f32 1.442695, %v595_v55 }
 0x234   : > { %v765_v57 = vpop.xlane.xlu0 %764 }
 0x235   : > { %1285 = vpow2.f32 %v596_v56  ;;  %v766_v58 = vsub.f32 %v759_v41, %v765_v57 }
 0x237   : > { %v767_v59 = vmul.f32 1.442695, %v766_v58 }
 0x238   : > { %v936_v60 = vpop.xlane.xlu0 %935 }
 0x239   : > { %1287 = vpow2.f32 %v767_v59  ;;  %v937_v61 = vsub.f32 %v930_v44, %v936_v60 }
 0x23b   : > { %v938_v62 = vmul.f32 1.442695, %v937_v61 }
 0x23d   : > { %1289 = vpow2.f32 %v938_v62 }
 0x23f   : > { %v1286_v63 = vpop.eup %1285 }
 0x240   : > { %1181 = vmatmul.mubr.msk.f32.vlgmr.msra.gmra.mrb[4].mxu1 %vm344_vm2, %v1286_v63  ;;  %v598_v1 = vsel %vm344_vm2, %v1286_v63, 0.0 }
 0x241   : > { %1189 = vmatpush3.msra.mxu1 %v332_v47  ;;  %599 = vadd.xlane.f32.xlu0 %v598_v1 }
 0x242   : > { %1190 = vmatprep.mubr.msk.f32.mxu1 %vm1437_vm1, %v1433_v0  ;;  %1198 = vmatprep.subr.mxu1 %v1433_v0 }
 0x243   : > { %v1288_v2 = vpop.eup %1287 }
 0x244   : > { %1191 = vmatmul.mubr.msk.f32.vlgmr.msra.gmra.mrb[6].mxu1 %vm344_vm2, %v1288_v2  ;;  %v769_v3 = vsel %vm344_vm2, %v1288_v2, 0.0 }
 0x245   : > { %1199 = vmatpush3.msra.mxu1 %v334_v48  ;;  %770 = vadd.xlane.f32.xlu1 %v769_v3 }
 0x246   : > { %1200 = vmatprep.mubr.msk.f32.mxu1 %vm1437_vm1, %v1433_v0 }
 0x247   : > { %v1290_v4 = vpop.eup %1289 }
 0x248   : > { %1201 = vmatmul.mubr.msk.f32.vlgmr.msra.gmra.mrb[8].mxu1 %vm344_vm2, %v1290_v4  ;;  %v940_v5 = vsel %vm344_vm2, %v1290_v4, 0.0 }
 0x249   : > { %941 = vadd.xlane.f32.xlu0 %v940_v5 }
 0x26a   : > { %v429_v8 = vpop.xlane.xlu1 %428 }
 0x26b   : > { %1291 = vrcp.f32 %v429_v8 }
 0x275   : > { %v1292_v12 = vpop.eup %1291 }
 0x2af   : > { %v500_v6 = vpop.f32.mrb[2].mxu1 }
 0x2b0   : > { %v1172_v7 = vpop.f32.mrb[3].mxu1  ;;  %v507_v14 = vmul.f32 %v1292_v12, %v500_v6 }
 0x2ce   : > { %v600_v9 = vpop.xlane.xlu0 %599 }
 0x2cf   : > { %1293 = vrcp.f32 %v600_v9 }
 0x2d2   : > { %v771_v10 = vpop.xlane.xlu1 %770 }
 0x2d3   : > { %1295 = vrcp.f32 %v771_v10 }
 0x2d6   : > { %v942_v11 = vpop.xlane.xlu0 %941 }
 0x2d7   : > { %1297 = vrcp.f32 %v942_v11 }
 0x2d9   : > { %v1294_v0 = vpop.eup %1293 }
 0x2dd   : > { %v1296_v18 = vpop.eup %1295 }
 0x2e1   : > { %v1298_v23 = vpop.eup %1297 }
 0x313   : > { %v671_v13 = vpop.f32.mrb[4].mxu1 }
 0x314   : > { %v678_v15 = vmul.f32 %v1294_v0, %v671_v13  ;;  %v1182_v16 = vpop.f32.mrb[5].mxu1 }
 0x316   : > { %v679_v17 = vadd.f32 %v678_v15, %v507_v14 }
 0x317   : > { %v842_v19 = vpop.f32.mrb[6].mxu1 }
 0x318   : > { %v849_v20 = vmul.f32 %v1296_v18, %v842_v19  ;;  %v1192_v21 = vpop.f32.mrb[7].mxu1 }
 0x31a   : > { %v850_v22 = vadd.f32 %v849_v20, %v679_v17 }
 0x31b   : > { %v1013_v24 = vpop.f32.mrb[8].mxu1 }
 0x31c   : > { %v1020_v25 = vmul.f32 %v1298_v23, %v1013_v24  ;;  %v1202_v26 = vpop.f32.mrb[9].mxu1 }
 0x31e   : > { %v1021_v27 = vadd.f32 %v1020_v25, %v850_v22 }
 0x320   : > { %1024 = vst [vmem:[%s173_s23] sm:$0xff] %v1021_v27 }
 0x321   : > { %1370 = shalt.err (!%p1367_p7)
}
 0x322   : > { %s1371_s24 = scalar_lea.hbm %s1658_s4, 128  ;;  %s1375_s26 = scalar_lea.hbm %s1704_s2, 256 }
 0x323   : > { %p1372_p9 = scmp.ne.s32.totalorder %s1658_s4, %s1371_s24  ;;  %p1376_p0 = scmp.lt.u32.totalorder %s1658_s4, %s1704_s2 }
 0x324   : > { %p1377_p11 = scmp.lt.u32.totalorder %s1375_s26, %s1371_s24  ;;  %p1379_p4 = scmp.lt.u32.totalorder %s1371_s24, %s1658_s4 }
 0x325   : > { %p1373_p2 = pnand %p1372_p9, %p1545_p12 }
 0x326   : > { %p1378_p1 = por %p1377_p11, %p1376_p0 }
 0x327   : > { %p1374_p5 = pneg %p1373_p2 }
 0x328   : > { %p1380_p6 = por %p1379_p4, %p1378_p1 }
 0x32a   : > { %p1381_p8 = pnand %p1380_p6, %p1374_p5 }
 0x32c   : > { %1384 = shalt.err (!%p1381_p8)
}
 0x32d   : > { %1225 = dma.vmem_to_hbm [thread:$0]  (%p1545_p12), %s1660_s28, 128, %s1658_s4, %s1026_s5  }
 0x32e PF: > { %s1051_s17 = sand.u32 1, %s1415_s9   ;;  %p1719_p10 = scmp.ne.s32.totalorder %s1709_s16, 0 }
 0x32f   : > { %p1720_p13 = scmp.ge.s32.totalorder %s1427_s12, 2  ;;  %s1052_s15 = scalar_lea.sflag [#allocation6], %s1051_s17 }
 0x331   : > { %p1236_p3 = pnand %p1720_p13, %p1719_p10 }
 0x333   : > { %1410 = dma.done.wait (!%p1236_p3), %s1052_s15, 128  }
 0x334   : > { %1412 = vsyncadd (!%p1236_p3), %s1052_s15, 4294967168  ;;  %p16_p7 = scmp.ge.s32.totalorder %s1510_s21, 4   ;;  %s1721_s9 = smov %s1419_s10 }
 0x335   : > { %s1722_s10 = smov %s1423_s11  ;;  %s1723_s11 = smov %s1541_s8 }
 0x336   : > { %s1724_s12 = smov %s1510_s21  ;;  %18 = sbr.rel (!%p16_p7) target bundleno = 6 (0x6), region = 77 }
 0x33d   :  { %1057 = vsyncpa [#allocation5], 1 }
 0x33e   :  { %1059 = vsyncpa [#allocation5 + $0x1], 1 }
 0x33f   :  { %1060 = vsyncpa [#allocation8], 1 }
 0x340   :  { %1061 = vsyncpa [#allocation6], 1 }
 0x341   :  { %1063 = vsyncpa [#allocation6 + $0x1], 1 }

</bundles_post_ra>
